<compile_context>
chip_gen: v5e
topology: v5e:2x2
jax: 0.10.0
libtpu: 0.0.40
codegen_flags: <defaults>
</compile_context>

<pallas_src>
import math
import jax
import jax.numpy as jnp
from jax.experimental import pallas as pl
from jax.experimental.pallas import tpu as pltpu

BN_EPS = 1e-5
_VMEM_LIMIT = 32 * 1024 * 1024  # fits v5e/v6e/v7x scoped VMEM comfortably


def _round_up(x, m):
    return (x + m - 1) // m * m


# ---------- Pass 1: conv matmul + per-tile partial BN statistics ----------
def stats_kernel(p_ref, w_ref, stats_ref):
    # p_ref: (tm, Kp) bf16, w_ref: (Kp, Cp) bf16, stats_ref: (1, 2, Cp) f32
    acc = jnp.dot(p_ref[...], w_ref[...], preferred_element_type=jnp.float32)
    s = jnp.sum(acc, axis=0, keepdims=True)           # (1, Cp)
    sq = jnp.sum(acc * acc, axis=0, keepdims=True)    # (1, Cp)
    stats_ref[...] = jnp.concatenate([s, sq], axis=0)[None]


# ---------- Pass 2: conv matmul recompute + fused BN(scale/shift) + ReLU ----------
def apply_kernel(p_ref, w_ref, scale_ref, shift_ref, o_ref):
    acc = jnp.dot(p_ref[...], w_ref[...], preferred_element_type=jnp.float32)
    y = acc * scale_ref[...] + shift_ref[...]          # single mul+add per element
    o_ref[...] = jnp.maximum(y, 0.0).astype(o_ref.dtype)


def im2col_nchw(x, k, stride, pad):
    """x: (N, C, H, W) -> patches (N*Ho*Wo, C*k*k) with cols ordered (c, kh, kw)."""
    N, C, H, W = x.shape
    xp = jnp.pad(x, ((0, 0), (0, 0), (pad, pad), (pad, pad)))
    Ho = (H + 2 * pad - k) // stride + 1
    Wo = (W + 2 * pad - k) // stride + 1
    taps = []
    for i in range(k):
        for j in range(k):
            taps.append(xp[:, :, i:i + stride * Ho:stride, j:j + stride * Wo:stride])
    patches = jnp.stack(taps, axis=2)                  # (N, C, k*k, Ho, Wo)
    patches = jnp.transpose(patches, (0, 3, 4, 1, 2))  # (N, Ho, Wo, C, k*k)
    return patches.reshape(N * Ho * Wo, C * k * k), Ho, Wo


def conv_block_forward(x, weight, gamma, beta, *, stride=2, padding=1,
                       tile_m=256, compute_dtype=jnp.bfloat16):
    """x: (N, C_in, H, W), weight: (C_out, C_in, k, k). Returns (N, C_out, Ho, Wo)."""
    N, C_in, H, W = x.shape
    C_out, _, kH, kW = weight.shape
    assert kH == kW
    patches, Ho, Wo = im2col_nchw(x, kH, stride, padding)       # (M, K) f32
    M, K = patches.shape

    # Lane-dense / tile-friendly padding.
    Kp = max(128, _round_up(K, 128))
    Cp = max(128, _round_up(C_out, 128))
    tm = min(tile_m, max(128, _round_up(M, 128)))
    Mp = _round_up(M, tm)
    Mt = Mp // tm

    patches_p = jnp.zeros((Mp, Kp), compute_dtype).at[:M, :K].set(
        patches.astype(compute_dtype))
    w_mat = jnp.zeros((Kp, Cp), compute_dtype).at[:K, :C_out].set(
        weight.reshape(C_out, K).T.astype(compute_dtype))

    itemsize = jnp.dtype(compute_dtype).itemsize
    mm_flops = 2 * Mp * Kp * Cp

    # ---- Pass 1: partial per-channel sum / sumsq per M-tile ----
    stats = pl.pallas_call(
        stats_kernel,
        out_shape=jax.ShapeDtypeStruct((Mt, 2, Cp), jnp.float32),
        grid=(Mt,),
        in_specs=[
            pl.BlockSpec((tm, Kp), lambda m: (m, 0)),
            pl.BlockSpec((Kp, Cp), lambda m: (0, 0)),
        ],
        out_specs=pl.BlockSpec((1, 2, Cp), lambda m: (m, 0, 0)),
        compiler_params=pltpu.CompilerParams(
            dimension_semantics=("parallel",),
            vmem_limit_bytes=_VMEM_LIMIT),
        cost_estimate=pl.CostEstimate(
            flops=mm_flops, transcendentals=0,
            bytes_accessed=Mp * Kp * itemsize + Kp * Cp * itemsize + Mt * 2 * Cp * 4),
    )(patches_p, w_mat)

    # ---- Tiny glue: global batch stats + fold BN into one scale/shift ----
    inv_m = 1.0 / float(M)                       # divide by TRUE M; zero-padded rows add 0
    mean = stats[:, 0, :].sum(axis=0) * inv_m                            # (Cp,)
    var = jnp.maximum(stats[:, 1, :].sum(axis=0) * inv_m - mean * mean, 0.0)
    inv_std = jax.lax.rsqrt(var + BN_EPS)
    gamma_p = jnp.zeros((Cp,), jnp.float32).at[:C_out].set(gamma.astype(jnp.float32))
    beta_p = jnp.zeros((Cp,), jnp.float32).at[:C_out].set(beta.astype(jnp.float32))
    scale = (gamma_p * inv_std).reshape(1, Cp)
    shift = (beta_p - mean * gamma_p * inv_std).reshape(1, Cp)

    # ---- Pass 2: recompute matmul, apply scale/shift + ReLU ----
    out_flat = pl.pallas_call(
        apply_kernel,
        out_shape=jax.ShapeDtypeStruct((Mp, Cp), jnp.float32),
        grid=(Mt,),
        in_specs=[
            pl.BlockSpec((tm, Kp), lambda m: (m, 0)),
            pl.BlockSpec((Kp, Cp), lambda m: (0, 0)),
            pl.BlockSpec((1, Cp), lambda m: (0, 0)),
            pl.BlockSpec((1, Cp), lambda m: (0, 0)),
        ],
        out_specs=pl.BlockSpec((tm, Cp), lambda m: (m, 0)),
        compiler_params=pltpu.CompilerParams(
            dimension_semantics=("parallel",),
            vmem_limit_bytes=_VMEM_LIMIT),
        cost_estimate=pl.CostEstimate(
            flops=mm_flops + 2 * Mp * Cp, transcendentals=0,
            bytes_accessed=Mp * Kp * itemsize + Kp * Cp * itemsize + Mp * Cp * 4),
    )(patches_p, w_mat, scale, shift)

    # Slice off padding; return NCHW to match the PyTorch module's output layout.
    out = out_flat[:M, :C_out].reshape(N, Ho, Wo, C_out)
    return jnp.transpose(out, (0, 3, 1, 2))


if __name__ == "__main__":
    # Small deterministic setup consistent with the module's __init__/forward.
    N, C_in, H, W = 2, 4, 16, 16
    C_out, k, stride, pad = 8, 3, 2, 1

    key = jax.random.PRNGKey(0)
    kx, kw = jax.random.split(key)

    x = jax.random.normal(kx, (N, C_in, H, W), dtype=jnp.float32)

    # kaiming_normal_(mode='fan_out', nonlinearity='relu'): std = sqrt(2 / (C_out*k*k))
    fan_out = C_out * k * k
    std = math.sqrt(2.0 / fan_out)
    weight = std * jax.random.normal(kw, (C_out, C_in, k, k), dtype=jnp.float32)

    # BatchNorm params as initialized: weight=1, bias=0.
    gamma = jnp.ones((C_out,), dtype=jnp.float32)
    beta = jnp.zeros((C_out,), dtype=jnp.float32)

    @jax.jit
    def fwd(x, weight, gamma, beta):
        return conv_block_forward(x, weight, gamma, beta, stride=stride, padding=pad)

    out = fwd(x, weight, gamma, beta)
    jax.block_until_ready(out)

    assert out.shape == (N, C_out, H // stride, W // stride), out.shape
    assert bool(jnp.all(jnp.isfinite(out))), "non-finite values in output"
    assert bool(jnp.all(out >= 0.0)), "ReLU violated"
    print("KERNEL_OK")
</pallas_src>

<mosaic_0001>
module attributes {stable_mosaic.version = 11 : i64} {
  func.func @stats_kernel(%arg0: i32, %arg1: memref<128x128xbf16, #tpu.memory_space<vmem>>, %arg2: memref<128x128xbf16, #tpu.memory_space<vmem>>, %arg3: memref<1x2x128xf32, #tpu.memory_space<vmem>>) attributes {dimension_semantics = [#tpu.dimension_semantics<parallel>], iteration_bounds = array<i64: 1>, scalar_prefetch = 0 : i64, scratch_operands = 0 : i64, tpu.core_type = #tpu.core_type<tc>, window_params = [{transform_indices = @transform_0, window_bounds = array<i64: 128, 128>}, {pipeline_mode = #tpu.pipeline_mode<synchronous>, transform_indices = @transform_1, window_bounds = array<i64: 128, 128>}, {transform_indices = @transform_2, window_bounds = array<i64: 1, 2, 128>}]} {
    %c0 = arith.constant 0 : index
    %c0_0 = arith.constant 0 : index
    %0 = vector.load %arg1[%c0, %c0_0] : memref<128x128xbf16, #tpu.memory_space<vmem>>, vector<128x128xbf16>
    %c0_1 = arith.constant 0 : index
    %c0_2 = arith.constant 0 : index
    %1 = vector.load %arg2[%c0_1, %c0_2] : memref<128x128xbf16, #tpu.memory_space<vmem>>, vector<128x128xbf16>
    %cst = arith.constant dense<0.000000e+00> : vector<128x128xf32>
    %2 = tpu.matmul %0, %1, %cst {dimension_numbers = #tpu.dot_dimension_numbers<[1], [0], [0], [1], [0, 0, 1, 1], [], []>} : vector<128x128xbf16>, vector<128x128xbf16>, vector<128x128xf32> -> vector<128x128xf32>
    %cst_3 = arith.constant dense<0.000000e+00> : vector<128xf32>
    %3 = vector.multi_reduction <add>, %2, %cst_3 [0] : vector<128x128xf32> to vector<128xf32>
    %4 = vector.shape_cast %3 : vector<128xf32> to vector<1x128xf32>
    %5 = arith.mulf %2, %2 : vector<128x128xf32>
    %cst_4 = arith.constant dense<0.000000e+00> : vector<128xf32>
    %6 = vector.multi_reduction <add>, %5, %cst_4 [0] : vector<128x128xf32> to vector<128xf32>
    %7 = vector.shape_cast %6 : vector<128xf32> to vector<1x128xf32>
    %8 = tpu.concatenate %4, %7 in 0 : vector<1x128xf32>, vector<1x128xf32> -> vector<2x128xf32>
    %9 = vector.shape_cast %8 : vector<2x128xf32> to vector<1x2x128xf32>
    %c0_5 = arith.constant 0 : index
    %c0_6 = arith.constant 0 : index
    %c0_7 = arith.constant 0 : index
    %10 = vector.load %arg3[%c0_5, %c0_6, %c0_7] : memref<1x2x128xf32, #tpu.memory_space<vmem>>, vector<1x2x128xf32>
    tpu.vector_store %arg3[%c0_5, %c0_6, %c0_7], %9 {strides = array<i32>} : memref<1x2x128xf32, #tpu.memory_space<vmem>>, vector<1x2x128xf32>,
    return
  }
  func.func @transform_0(%arg0: i32) -> (i32, i32) {
    %c0_i32 = arith.constant 0 : i32
    %c0_i32_0 = arith.constant 0 : i32
    return %arg0, %c0_i32 : i32, i32
  }
  func.func @transform_1(%arg0: i32) -> (i32, i32) {
    %c0_i32 = arith.constant 0 : i32
    %c0_i32_0 = arith.constant 0 : i32
    %c0_i32_1 = arith.constant 0 : i32
    return %c0_i32, %c0_i32_0 : i32, i32
  }
  func.func @transform_2(%arg0: i32) -> (i32, i32, i32) {
    %c0_i32 = arith.constant 0 : i32
    %c0_i32_0 = arith.constant 0 : i32
    %c0_i32_1 = arith.constant 0 : i32
    return %arg0, %c0_i32, %c0_i32_0 : i32, i32, i32
  }
}

module attributes {stable_mosaic.version = 11 : i64} {
  func.func @apply_kernel(%arg0: i32, %arg1: memref<128x128xbf16, #tpu.memory_space<vmem>>, %arg2: memref<128x128xbf16, #tpu.memory_space<vmem>>, %arg3: memref<1x128xf32, #tpu.memory_space<vmem>>, %arg4: memref<1x128xf32, #tpu.memory_space<vmem>>, %arg5: memref<128x128xf32, #tpu.memory_space<vmem>>) attributes {dimension_semantics = [#tpu.dimension_semantics<parallel>], iteration_bounds = array<i64: 1>, scalar_prefetch = 0 : i64, scratch_operands = 0 : i64, tpu.core_type = #tpu.core_type<tc>, window_params = [{transform_indices = @transform_0, window_bounds = array<i64: 128, 128>}, {pipeline_mode = #tpu.pipeline_mode<synchronous>, transform_indices = @transform_1, window_bounds = array<i64: 128, 128>}, {pipeline_mode = #tpu.pipeline_mode<synchronous>, transform_indices = @transform_2, window_bounds = array<i64: 1, 128>}, {pipeline_mode = #tpu.pipeline_mode<synchronous>, transform_indices = @transform_3, window_bounds = array<i64: 1, 128>}, {transform_indices = @transform_4, window_bounds = array<i64: 128, 128>}]} {
    %c0 = arith.constant 0 : index
    %c0_0 = arith.constant 0 : index
    %0 = vector.load %arg1[%c0, %c0_0] : memref<128x128xbf16, #tpu.memory_space<vmem>>, vector<128x128xbf16>
    %c0_1 = arith.constant 0 : index
    %c0_2 = arith.constant 0 : index
    %1 = vector.load %arg2[%c0_1, %c0_2] : memref<128x128xbf16, #tpu.memory_space<vmem>>, vector<128x128xbf16>
    %cst = arith.constant dense<0.000000e+00> : vector<128x128xf32>
    %2 = tpu.matmul %0, %1, %cst {dimension_numbers = #tpu.dot_dimension_numbers<[1], [0], [0], [1], [0, 0, 1, 1], [], []>} : vector<128x128xbf16>, vector<128x128xbf16>, vector<128x128xf32> -> vector<128x128xf32>
    %c0_3 = arith.constant 0 : index
    %c0_4 = arith.constant 0 : index
    %3 = vector.load %arg3[%c0_3, %c0_4] : memref<1x128xf32, #tpu.memory_space<vmem>>, vector<1x128xf32>
    %4 = vector.broadcast %3 : vector<1x128xf32> to vector<128x128xf32>
    %5 = arith.mulf %2, %4 : vector<128x128xf32>
    %c0_5 = arith.constant 0 : index
    %c0_6 = arith.constant 0 : index
    %6 = vector.load %arg4[%c0_5, %c0_6] : memref<1x128xf32, #tpu.memory_space<vmem>>, vector<1x128xf32>
    %7 = vector.broadcast %6 : vector<1x128xf32> to vector<128x128xf32>
    %8 = arith.addf %5, %7 : vector<128x128xf32>
    %cst_7 = arith.constant 0.000000e+00 : f32
    %9 = vector.broadcast %cst_7 : f32 to vector<128x128xf32>
    %10 = arith.maximumf %8, %9 : vector<128x128xf32>
    %c0_8 = arith.constant 0 : index
    %c0_9 = arith.constant 0 : index
    %11 = vector.load %arg5[%c0_8, %c0_9] : memref<128x128xf32, #tpu.memory_space<vmem>>, vector<128x128xf32>
    tpu.vector_store %arg5[%c0_8, %c0_9], %10 {strides = array<i32>} : memref<128x128xf32, #tpu.memory_space<vmem>>, vector<128x128xf32>,
    return
  }
  func.func @transform_0(%arg0: i32) -> (i32, i32) {
    %c0_i32 = arith.constant 0 : i32
    %c0_i32_0 = arith.constant 0 : i32
    return %arg0, %c0_i32 : i32, i32
  }
  func.func @transform_1(%arg0: i32) -> (i32, i32) {
    %c0_i32 = arith.constant 0 : i32
    %c0_i32_0 = arith.constant 0 : i32
    %c0_i32_1 = arith.constant 0 : i32
    return %c0_i32, %c0_i32_0 : i32, i32
  }
  func.func @transform_2(%arg0: i32) -> (i32, i32) {
    %c0_i32 = arith.constant 0 : i32
    %c0_i32_0 = arith.constant 0 : i32
    %c0_i32_1 = arith.constant 0 : i32
    return %c0_i32, %c0_i32_0 : i32, i32
  }
  func.func @transform_3(%arg0: i32) -> (i32, i32) {
    %c0_i32 = arith.constant 0 : i32
    %c0_i32_0 = arith.constant 0 : i32
    %c0_i32_1 = arith.constant 0 : i32
    return %c0_i32, %c0_i32_0 : i32, i32
  }
  func.func @transform_4(%arg0: i32) -> (i32, i32) {
    %c0_i32 = arith.constant 0 : i32
    %c0_i32_0 = arith.constant 0 : i32
    return %arg0, %c0_i32 : i32, i32
  }
}

</mosaic_0001>

<bundles_post_ra>
// kernel: fwd.2
= control target key start
LH: loop header
LB: loop body
LE: loop exit
PB: predicated region body
PF: predicated region fallthrough
CT: control target
= control target key end

     0   :  { %vm246_vm0 = vcmask 1040384   ;;  %s423_s1 = inlined_call_operand.vmem [shape: bf16[128,128], index: 1, kind: input, shape index: {}]   ;;  %s424_s0 = inlined_call_operand.vmem [shape: bf16[128,128], index: 0, kind: input, shape index: {}]   ;;  %s425_s2 = inlined_call_operand.vmem [shape: f32[1,2,128], index: 2, kind: output, shape index: {}]  }
   0x1   :  { %v332_v0 = vld [vmem:[%s423_s1 + $0x38] sm:$0xff]  ;;  %v331_v1 = vld [vmem:[%s423_s1 + $0x30] sm:$0xff]  ;;  %v330_v2 = vld [vmem:[%s423_s1 + $0x28] sm:$0xff] }
   0x2   :  { %139 = vmatpush.bf16.msra.mxu0 %v332_v0  ;;  %333 = vmatpush.bf16.msra.mxu1 %v332_v0  ;;  %v329_v3 = vld [vmem:[%s423_s1 + $0x20] sm:$0xff]  ;;  %v328_v4 = vld [vmem:[%s423_s1 + $0x18] sm:$0xff]  ;;  %v327_v5 = vld [vmem:[%s423_s1 + $0x10] sm:$0xff] }
   0x3   :  { %334 = vmatpush.bf16.msra.mxu2 %v332_v0  ;;  %335 = vmatpush.bf16.msra.mxu3 %v332_v0  ;;  %v326_v6 = vld [vmem:[%s423_s1 + $0x8] sm:$0xff]  ;;  %v325_v7 = vld [vmem:[%s423_s1] sm:$0xff]  ;;  %v319_v9 = vld [vmem:[%s424_s0 + $0x10] sm:$0xff] }
   0x4   :  { %v317_v8 = vld [vmem:[%s424_s0] sm:$0xff]  ;;  %v323_v11 = vld [vmem:[%s424_s0 + $0x30] sm:$0xff]  ;;  %v318_v12 = vld [vmem:[%s424_s0 + $0x8] sm:$0xff] }
   0x5   :  { %v321_v10 = vld [vmem:[%s424_s0 + $0x20] sm:$0xff]  ;;  %v320_v13 = vld [vmem:[%s424_s0 + $0x18] sm:$0xff]  ;;  %v322_v14 = vld [vmem:[%s424_s0 + $0x28] sm:$0xff] }
   0x6   :  { %140 = vmatpush.bf16.msra.mxu0 %v331_v1  ;;  %336 = vmatpush.bf16.msra.mxu1 %v331_v1  ;;  %v324_v15 = vld [vmem:[%s424_s0 + $0x38] sm:$0xff] }
   0x7   :  { %337 = vmatpush.bf16.msra.mxu2 %v331_v1  ;;  %338 = vmatpush.bf16.msra.mxu3 %v331_v1 }
   0xa   :  { %141 = vmatpush.bf16.msra.mxu0 %v330_v2  ;;  %339 = vmatpush.bf16.msra.mxu1 %v330_v2 }
   0xb   :  { %340 = vmatpush.bf16.msra.mxu2 %v330_v2  ;;  %341 = vmatpush.bf16.msra.mxu3 %v330_v2 }
   0xe   :  { %142 = vmatpush.bf16.msra.mxu0 %v329_v3  ;;  %342 = vmatpush.bf16.msra.mxu1 %v329_v3 }
   0xf   :  { %343 = vmatpush.bf16.msra.mxu2 %v329_v3  ;;  %344 = vmatpush.bf16.msra.mxu3 %v329_v3 }
  0x12   :  { %143 = vmatpush.bf16.msra.mxu0 %v328_v4  ;;  %345 = vmatpush.bf16.msra.mxu1 %v328_v4 }
  0x13   :  { %346 = vmatpush.bf16.msra.mxu2 %v328_v4  ;;  %347 = vmatpush.bf16.msra.mxu3 %v328_v4 }
  0x16   :  { %144 = vmatpush.bf16.msra.mxu0 %v327_v5  ;;  %348 = vmatpush.bf16.msra.mxu1 %v327_v5 }
  0x17   :  { %349 = vmatpush.bf16.msra.mxu2 %v327_v5  ;;  %350 = vmatpush.bf16.msra.mxu3 %v327_v5 }
  0x1a   :  { %145 = vmatpush.bf16.msra.mxu0 %v326_v6  ;;  %351 = vmatpush.bf16.msra.mxu1 %v326_v6 }
  0x1b   :  { %352 = vmatpush.bf16.msra.mxu2 %v326_v6  ;;  %353 = vmatpush.bf16.msra.mxu3 %v326_v6 }
  0x1e   :  { %146 = vmatpush.bf16.msra.mxu0 %v325_v7  ;;  %354 = vmatpush.bf16.msra.mxu1 %v325_v7 }
  0x1f   :  { %355 = vmatpush.bf16.msra.mxu2 %v325_v7  ;;  %356 = vmatpush.bf16.msra.mxu3 %v325_v7 }
  0x21   :  { %147 = vmatmul.bf16.vlgmr.msra.gmra.mxu0 %v317_v8  ;;  %157 = vmatmul.bf16.vlgmr.msra.gmra.mxu1 %v319_v9 }
  0x22   :  { %167 = vmatmul.bf16.vlgmr.msra.gmra.mxu2 %v321_v10  ;;  %177 = vmatmul.bf16.vlgmr.msra.gmra.mxu3 %v323_v11 }
  0x31   :  { %152 = vmatmul.bf16.gmra.mxu0 %v318_v12  ;;  %162 = vmatmul.bf16.gmra.mxu1 %v320_v13 }
  0x32   :  { %172 = vmatmul.bf16.gmra.mxu2 %v322_v14  ;;  %182 = vmatmul.bf16.gmra.mxu3 %v324_v15 }
  0x9e   :  { %v148_v16 = vpop.f32.mrf.mxu0  ;;  %v158_v17 = vpop.f32.mrf.mxu1 }
  0x9f   :  { %v209_v26 = vmul.f32 %v148_v16, %v148_v16  ;;  %v213_v36 = vmul.f32 %v158_v17, %v158_v17 }
  0xa5   :  { %v168_v19 = vpop.f32.mrf.mxu2  ;;  %v178_v22 = vpop.f32.mrf.mxu3 }
  0xa6   :  { %v150_v18 = vpop.f32.mrf.mxu0  ;;  %v160_v20 = vpop.f32.mrf.mxu1  ;;  %v217_v50 = vmul.f32 %v168_v19, %v168_v19  ;;  %v221_v0 = vmul.f32 %v178_v22, %v178_v22 }
  0xa7   :  { %v210_v24 = vmul.f32 %v150_v18, %v150_v18  ;;  %v188_v27 = vadd.f32 %v150_v18, %v148_v16  ;;  %v214_v40 = vmul.f32 %v160_v20, %v160_v20 }
  0xa9   :  { %v225_v29 = vadd.f32 %v210_v24, %v209_v26 }
  0xad   :  { %v170_v23 = vpop.f32.mrf.mxu2  ;;  %v180_v35 = vpop.f32.mrf.mxu3 }
  0xae   :  { %v153_v21 = vpop.f32.mrf.mxu0  ;;  %v163_v25 = vpop.f32.mrf.mxu1  ;;  %v218_v54 = vmul.f32 %v170_v23, %v170_v23  ;;  %v222_v3 = vmul.f32 %v180_v35, %v180_v35 }
  0xaf   :  { %v211_v28 = vmul.f32 %v153_v21, %v153_v21  ;;  %v189_v30 = vadd.f32 %v188_v27, %v153_v21  ;;  %v215_v44 = vmul.f32 %v163_v25, %v163_v25 }
  0xb1   :  { %v226_v32 = vadd.f32 %v225_v29, %v211_v28 }
  0xb5   :  { %v173_v39 = vpop.f32.mrf.mxu2  ;;  %v183_v53 = vpop.f32.mrf.mxu3 }
  0xb6   :  { %v155_v31 = vpop.f32.mrf.mxu0  ;;  %v165_v43 = vpop.f32.mrf.mxu1  ;;  %v219_v59 = vmul.f32 %v173_v39, %v173_v39  ;;  %v223_v8 = vmul.f32 %v183_v53, %v183_v53 }
  0xb7   :  { %v190_v33 = vadd.f32 %v189_v30, %v155_v31  ;;  %v212_v34 = vmul.f32 %v155_v31, %v155_v31  ;;  %v216_v48 = vmul.f32 %v165_v43, %v165_v43 }
  0xb9   :  { %v191_v37 = vadd.f32 %v190_v33, %v158_v17  ;;  %v227_v38 = vadd.f32 %v226_v32, %v212_v34 }
  0xbb   :  { %v228_v41 = vadd.f32 %v227_v38, %v213_v36  ;;  %v192_v42 = vadd.f32 %v191_v37, %v160_v20 }
  0xbd   :  { %v193_v45 = vadd.f32 %v192_v42, %v163_v25  ;;  %v229_v46 = vadd.f32 %v228_v41, %v214_v40  ;;  %v175_v57 = vpop.f32.mrf.mxu2  ;;  %v185_v6 = vpop.f32.mrf.mxu3 }
  0xbe   :  { %v220_v63 = vmul.f32 %v175_v57, %v175_v57  ;;  %v224_v12 = vmul.f32 %v185_v6, %v185_v6 }
  0xbf   :  { %v194_v47 = vadd.f32 %v193_v45, %v165_v43  ;;  %v230_v49 = vadd.f32 %v229_v46, %v215_v44 }
  0xc1   :  { %v195_v51 = vadd.f32 %v194_v47, %v168_v19  ;;  %v231_v52 = vadd.f32 %v230_v49, %v216_v48 }
  0xc3   :  { %v232_v55 = vadd.f32 %v231_v52, %v217_v50  ;;  %v196_v56 = vadd.f32 %v195_v51, %v170_v23 }
  0xc5   :  { %v197_v58 = vadd.f32 %v196_v56, %v173_v39  ;;  %v233_v60 = vadd.f32 %v232_v55, %v218_v54 }
  0xc7   :  { %v234_v61 = vadd.f32 %v233_v60, %v219_v59  ;;  %v198_v62 = vadd.f32 %v197_v58, %v175_v57 }
  0xc9   :  { %v199_v1 = vadd.f32 %v198_v62, %v178_v22  ;;  %v235_v2 = vadd.f32 %v234_v61, %v220_v63 }
  0xcb   :  { %v236_v4 = vadd.f32 %v235_v2, %v221_v0  ;;  %v200_v5 = vadd.f32 %v199_v1, %v180_v35 }
  0xcd   :  { %v201_v7 = vadd.f32 %v200_v5, %v183_v53  ;;  %v237_v9 = vadd.f32 %v236_v4, %v222_v3 }
  0xcf   :  { %v238_v10 = vadd.f32 %v237_v9, %v223_v8  ;;  %v202_v11 = vadd.f32 %v201_v7, %v185_v6 }
  0xd1   :  { %v203_v13 = vrot.slane %v202_v11, 4  ;;  %v239_v14 = vadd.f32 %v238_v10, %v224_v12 }
  0xd3   :  { %v204_v15 = vadd.f32 %v203_v13, %v202_v11  ;;  %v240_v16 = vrot.slane %v239_v14, 4 }
  0xd5   :  { %v205_v17 = vrot.slane %v204_v15, 2  ;;  %v241_v18 = vadd.f32 %v240_v16, %v239_v14 }
  0xd7   :  { %v206_v19 = vadd.f32 %v205_v17, %v204_v15  ;;  %v242_v20 = vrot.slane %v241_v18, 2 }
  0xd9   :  { %v207_v21 = vrot.slane %v206_v19, 1  ;;  %v243_v22 = vadd.f32 %v242_v20, %v241_v18 }
  0xdb   :  { %v244_v23 = vrot.slane %v243_v22, 1  ;;  %v208_v24 = vadd.f32 %v207_v21, %v206_v19 }
  0xdd   :  { %v245_v25 = vadd.f32 %v244_v23, %v243_v22 }
  0xdf   :  { %v247_v26 = vsel %vm246_vm0, %v208_v24, %v245_v25 }
  0xe0   :  { %248 = vst [vmem:[%s425_s2] sm:$0x3] %v247_v26 }

// kernel: fwd.3
= control target key start
LH: loop header
LB: loop body
LE: loop exit
PB: predicated region body
PF: predicated region fallthrough
CT: control target
= control target key end

     0   :  { %s539_s1 = inlined_call_operand.vmem [shape: bf16[128,128], index: 1, kind: input, shape index: {}]   ;;  %s540_s2 = inlined_call_operand.vmem [shape: f32[1,128], index: 2, kind: input, shape index: {}]   ;;  %s541_s3 = inlined_call_operand.vmem [shape: f32[1,128], index: 3, kind: input, shape index: {}]   ;;  %s542_s0 = inlined_call_operand.vmem [shape: bf16[128,128], index: 0, kind: input, shape index: {}]   ;;  %s543_s4 = inlined_call_operand.vmem [shape: f32[128,128], index: 4, kind: output, shape index: {}]  }
   0x1   :  { %v349_v0 = vld [vmem:[%s539_s1 + $0x38] sm:$0xff]  ;;  %v348_v1 = vld [vmem:[%s539_s1 + $0x30] sm:$0xff]  ;;  %v347_v2 = vld [vmem:[%s539_s1 + $0x28] sm:$0xff] }
   0x2   :  { %145 = vmatpush.bf16.msra.mxu0 %v349_v0  ;;  %350 = vmatpush.bf16.msra.mxu1 %v349_v0  ;;  %v346_v3 = vld [vmem:[%s539_s1 + $0x20] sm:$0xff]  ;;  %v345_v4 = vld [vmem:[%s539_s1 + $0x18] sm:$0xff]  ;;  %v344_v5 = vld [vmem:[%s539_s1 + $0x10] sm:$0xff] }
   0x3   :  { %351 = vmatpush.bf16.msra.mxu2 %v349_v0  ;;  %352 = vmatpush.bf16.msra.mxu3 %v349_v0  ;;  %v343_v6 = vld [vmem:[%s539_s1 + $0x8] sm:$0xff]  ;;  %v342_v7 = vld [vmem:[%s539_s1] sm:$0xff]  ;;  %v336_v9 = vld [vmem:[%s542_s0 + $0x10] sm:$0xff] }
   0x4   :  { %v334_v8 = vld [vmem:[%s542_s0] sm:$0xff]  ;;  %v340_v11 = vld [vmem:[%s542_s0 + $0x30] sm:$0xff]  ;;  %v335_v12 = vld [vmem:[%s542_s0 + $0x8] sm:$0xff] }
   0x5   :  { %v338_v10 = vld [vmem:[%s542_s0 + $0x20] sm:$0xff]  ;;  %v337_v13 = vld [vmem:[%s542_s0 + $0x18] sm:$0xff]  ;;  %v339_v14 = vld [vmem:[%s542_s0 + $0x28] sm:$0xff] }
   0x6   :  { %146 = vmatpush.bf16.msra.mxu0 %v348_v1  ;;  %353 = vmatpush.bf16.msra.mxu1 %v348_v1  ;;  %v341_v15 = vld [vmem:[%s542_s0 + $0x38] sm:$0xff]  ;;  %v452_v16 = vld [vmem:[%s540_s2] ss:$0 sm:$0xff] }
   0x7   :  { %354 = vmatpush.bf16.msra.mxu2 %v348_v1  ;;  %355 = vmatpush.bf16.msra.mxu3 %v348_v1  ;;  %v457_v17 = vld [vmem:[%s541_s3] ss:$0 sm:$0xff] }
   0xa   :  { %147 = vmatpush.bf16.msra.mxu0 %v347_v2  ;;  %356 = vmatpush.bf16.msra.mxu1 %v347_v2 }
   0xb   :  { %357 = vmatpush.bf16.msra.mxu2 %v347_v2  ;;  %358 = vmatpush.bf16.msra.mxu3 %v347_v2 }
   0xe   :  { %148 = vmatpush.bf16.msra.mxu0 %v346_v3  ;;  %359 = vmatpush.bf16.msra.mxu1 %v346_v3 }
   0xf   :  { %360 = vmatpush.bf16.msra.mxu2 %v346_v3  ;;  %361 = vmatpush.bf16.msra.mxu3 %v346_v3 }
  0x12   :  { %149 = vmatpush.bf16.msra.mxu0 %v345_v4  ;;  %362 = vmatpush.bf16.msra.mxu1 %v345_v4 }
  0x13   :  { %363 = vmatpush.bf16.msra.mxu2 %v345_v4  ;;  %364 = vmatpush.bf16.msra.mxu3 %v345_v4 }
  0x16   :  { %150 = vmatpush.bf16.msra.mxu0 %v344_v5  ;;  %365 = vmatpush.bf16.msra.mxu1 %v344_v5 }
  0x17   :  { %366 = vmatpush.bf16.msra.mxu2 %v344_v5  ;;  %367 = vmatpush.bf16.msra.mxu3 %v344_v5 }
  0x1a   :  { %151 = vmatpush.bf16.msra.mxu0 %v343_v6  ;;  %368 = vmatpush.bf16.msra.mxu1 %v343_v6 }
  0x1b   :  { %369 = vmatpush.bf16.msra.mxu2 %v343_v6  ;;  %370 = vmatpush.bf16.msra.mxu3 %v343_v6 }
  0x1e   :  { %152 = vmatpush.bf16.msra.mxu0 %v342_v7  ;;  %371 = vmatpush.bf16.msra.mxu1 %v342_v7 }
  0x1f   :  { %372 = vmatpush.bf16.msra.mxu2 %v342_v7  ;;  %373 = vmatpush.bf16.msra.mxu3 %v342_v7 }
  0x21   :  { %153 = vmatmul.bf16.vlgmr.msra.gmra.mxu0 %v334_v8  ;;  %163 = vmatmul.bf16.vlgmr.msra.gmra.mxu1 %v336_v9 }
  0x22   :  { %173 = vmatmul.bf16.vlgmr.msra.gmra.mxu2 %v338_v10  ;;  %183 = vmatmul.bf16.vlgmr.msra.gmra.mxu3 %v340_v11 }
  0x31   :  { %158 = vmatmul.bf16.gmra.mxu0 %v335_v12  ;;  %168 = vmatmul.bf16.gmra.mxu1 %v337_v13 }
  0x32   :  { %178 = vmatmul.bf16.gmra.mxu2 %v339_v14  ;;  %188 = vmatmul.bf16.gmra.mxu3 %v341_v15 }
  0x9e   :  { %v154_v18 = vpop.f32.mrf.mxu0  ;;  %v164_v19 = vpop.f32.mrf.mxu1 }
  0x9f   :  { %v198_v20 = vmul.f32 %v452_v16, %v154_v18  ;;  %v202_v21 = vmul.f32 %v452_v16, %v164_v19 }
  0xa1   :  { %v218_v22 = vadd.f32 %v457_v17, %v198_v20  ;;  %v222_v23 = vadd.f32 %v457_v17, %v202_v21 }
  0xa3   :  { %v234_v24 = vmax.f32 %v218_v22, 0.0  ;;  %v238_v25 = vmax.f32 %v222_v23, 0.0 }
  0xa5   :  { %250 = vst [vmem:[%s543_s4] sm:$0xff] %v234_v24  ;;  %v174_v26 = vpop.f32.mrf.mxu2  ;;  %v184_v27 = vpop.f32.mrf.mxu3 }
  0xa6   :  { %254 = vst [vmem:[%s543_s4 + $0x20] sm:$0xff] %v238_v25  ;;  %v206_v28 = vmul.f32 %v452_v16, %v174_v26  ;;  %v210_v29 = vmul.f32 %v452_v16, %v184_v27  ;;  %v156_v30 = vpop.f32.mrf.mxu0  ;;  %v166_v31 = vpop.f32.mrf.mxu1 }
  0xa7   :  { %v199_v32 = vmul.f32 %v452_v16, %v156_v30  ;;  %v203_v33 = vmul.f32 %v452_v16, %v166_v31 }
  0xa8   :  { %v226_v34 = vadd.f32 %v457_v17, %v206_v28  ;;  %v230_v35 = vadd.f32 %v457_v17, %v210_v29 }
  0xa9   :  { %v219_v36 = vadd.f32 %v457_v17, %v199_v32  ;;  %v223_v37 = vadd.f32 %v457_v17, %v203_v33 }
  0xaa   :  { %v242_v38 = vmax.f32 %v226_v34, 0.0  ;;  %v246_v39 = vmax.f32 %v230_v35, 0.0 }
  0xab   :  { %v235_v40 = vmax.f32 %v219_v36, 0.0  ;;  %v239_v41 = vmax.f32 %v223_v37, 0.0 }
  0xac   :  { %258 = vst [vmem:[%s543_s4 + $0x40] sm:$0xff] %v242_v38 }
  0xad   :  { %262 = vst [vmem:[%s543_s4 + $0x60] sm:$0xff] %v246_v39  ;;  %v176_v42 = vpop.f32.mrf.mxu2  ;;  %v186_v43 = vpop.f32.mrf.mxu3 }
  0xae   :  { %251 = vst [vmem:[%s543_s4 + $0x8] sm:$0xff] %v235_v40  ;;  %v207_v44 = vmul.f32 %v452_v16, %v176_v42  ;;  %v211_v45 = vmul.f32 %v452_v16, %v186_v43  ;;  %v159_v46 = vpop.f32.mrf.mxu0  ;;  %v169_v47 = vpop.f32.mrf.mxu1 }
  0xaf   :  { %255 = vst [vmem:[%s543_s4 + $0x28] sm:$0xff] %v239_v41  ;;  %v200_v48 = vmul.f32 %v452_v16, %v159_v46  ;;  %v204_v49 = vmul.f32 %v452_v16, %v169_v47 }
  0xb0   :  { %v227_v50 = vadd.f32 %v457_v17, %v207_v44  ;;  %v231_v51 = vadd.f32 %v457_v17, %v211_v45 }
  0xb1   :  { %v220_v52 = vadd.f32 %v457_v17, %v200_v48  ;;  %v224_v53 = vadd.f32 %v457_v17, %v204_v49 }
  0xb2   :  { %v243_v54 = vmax.f32 %v227_v50, 0.0  ;;  %v247_v55 = vmax.f32 %v231_v51, 0.0 }
  0xb3   :  { %v236_v56 = vmax.f32 %v220_v52, 0.0  ;;  %v240_v57 = vmax.f32 %v224_v53, 0.0 }
  0xb4   :  { %259 = vst [vmem:[%s543_s4 + $0x48] sm:$0xff] %v243_v54 }
  0xb5   :  { %263 = vst [vmem:[%s543_s4 + $0x68] sm:$0xff] %v247_v55  ;;  %v179_v58 = vpop.f32.mrf.mxu2  ;;  %v189_v59 = vpop.f32.mrf.mxu3 }
  0xb6   :  { %252 = vst [vmem:[%s543_s4 + $0x10] sm:$0xff] %v236_v56  ;;  %v208_v60 = vmul.f32 %v452_v16, %v179_v58  ;;  %v212_v61 = vmul.f32 %v452_v16, %v189_v59  ;;  %v161_v62 = vpop.f32.mrf.mxu0  ;;  %v171_v63 = vpop.f32.mrf.mxu1 }
  0xb7   :  { %256 = vst [vmem:[%s543_s4 + $0x30] sm:$0xff] %v240_v57  ;;  %v201_v0 = vmul.f32 %v452_v16, %v161_v62  ;;  %v205_v1 = vmul.f32 %v452_v16, %v171_v63 }
  0xb8   :  { %v228_v2 = vadd.f32 %v457_v17, %v208_v60  ;;  %v232_v3 = vadd.f32 %v457_v17, %v212_v61 }
  0xb9   :  { %v221_v4 = vadd.f32 %v457_v17, %v201_v0  ;;  %v225_v5 = vadd.f32 %v457_v17, %v205_v1 }
  0xba   :  { %v244_v6 = vmax.f32 %v228_v2, 0.0  ;;  %v248_v7 = vmax.f32 %v232_v3, 0.0 }
  0xbb   :  { %v237_v8 = vmax.f32 %v221_v4, 0.0  ;;  %v241_v9 = vmax.f32 %v225_v5, 0.0 }
  0xbc   :  { %260 = vst [vmem:[%s543_s4 + $0x50] sm:$0xff] %v244_v6 }
  0xbd   :  { %264 = vst [vmem:[%s543_s4 + $0x70] sm:$0xff] %v248_v7  ;;  %v181_v10 = vpop.f32.mrf.mxu2  ;;  %v191_v11 = vpop.f32.mrf.mxu3 }
  0xbe   :  { %253 = vst [vmem:[%s543_s4 + $0x18] sm:$0xff] %v237_v8  ;;  %v209_v12 = vmul.f32 %v452_v16, %v181_v10  ;;  %v213_v13 = vmul.f32 %v452_v16, %v191_v11 }
  0xbf   :  { %257 = vst [vmem:[%s543_s4 + $0x38] sm:$0xff] %v241_v9 }
  0xc0   :  { %v229_v14 = vadd.f32 %v457_v17, %v209_v12  ;;  %v233_v15 = vadd.f32 %v457_v17, %v213_v13 }
  0xc2   :  { %v245_v18 = vmax.f32 %v229_v14, 0.0  ;;  %v249_v19 = vmax.f32 %v233_v15, 0.0 }
  0xc4   :  { %261 = vst [vmem:[%s543_s4 + $0x58] sm:$0xff] %v245_v18 }
  0xc5   :  { %265 = vst [vmem:[%s543_s4 + $0x78] sm:$0xff] %v249_v19 }

</bundles_post_ra>
